<compile_context>
chip_gen: v6e
topology: v6e:2x2x1
jax: 0.10.0
libtpu: 0.0.40
codegen_flags: <defaults>
</compile_context>

<pallas_src>
import functools

import jax
import jax.numpy as jnp
from jax.experimental import pallas as pl
from jax.experimental.pallas import tpu as pltpu


def _round_up(x, m):
    return (x + m - 1) // m * m


def _largevis_neg_loss_kernel(g_ref, w_ref, out_ref, *,
                              n_neg, d, pos_times, neg_times, gamma):
    """g_ref: (tb, (2+n_neg)*D) packed [x | y_pos | negs...]; w_ref: (tb,1) f32."""
    f32 = jnp.float32
    tb = g_ref.shape[0]
    nd = 1 + n_neg                                   # distance slots: pos + negatives

    xv = g_ref[:, 0:d].astype(f32)                   # (tb, D) slot 0, loaded once

    # Accumulate all distances into ONE (tb, 1+n_neg) lane block.  Each slot is
    # a per-iteration ref slice, so only one (tb, D) partner is live at a time
    # (bounded VMEM/vreg working set even for large n_neg).
    slot = jax.lax.broadcasted_iota(jnp.int32, (tb, nd), 1)
    dist = jnp.zeros((tb, nd), f32)
    for s in range(nd):                              # static unroll over slots
        diff = xv - g_ref[:, (s + 1) * d:(s + 2) * d].astype(f32)
        col = jnp.sum(diff * diff, axis=1, keepdims=True)           # (tb, 1)
        dist = dist + jnp.where(slot == s, col, 0.0)

    # Batched probability / clamp / log: one divide, one clamp, one log over
    # the whole block instead of (n_neg + 1) lane-sparse passes.
    is_pos = slot == 0
    p = 1.0 / (1.0 + 0.25 * dist)
    upper = jnp.where(is_pos, 1.0 - 1e-12, 0.99)     # per-slot clamp upper bound
    p = jnp.maximum(jnp.minimum(p, upper), 1e-12)
    log_arg = jnp.where(is_pos, p, 1.0 - p)          # log(p_pos) vs log(1 - p_neg)
    coeff = jnp.where(is_pos, pos_times, gamma * neg_times)
    per_sample = jnp.sum(jnp.log(log_arg) * coeff, axis=1, keepdims=True)  # (tb,1)

    contribution = jnp.sum(w_ref[...] * per_sample)  # scalar partial for this tile

    # One partial per grid step, broadcast into a tile-aligned block so the grid
    # axis stays "parallel" (no serial accumulator; v7x shards tiles across TCs).
    out_ref[...] = jnp.broadcast_to(contribution, out_ref.shape)


def _vmem_capacity_bytes():
    try:
        info = pltpu.get_tpu_info()
        for attr in ("vmem_capacity_bytes", "vmem_size_bytes", "vmem_bytes"):
            v = getattr(info, attr, None)
            if v:
                return int(v)
    except Exception:
        pass
    return 64 * 1024 * 1024                          # unknown -> assume smallest (v7x-like)


def _budgets():
    """(input VMEM budget for tile sizing, vmem_limit_bytes) per generation."""
    cap = _vmem_capacity_bytes()
    if cap >= 96 * 1024 * 1024:                      # v5e / v6e: 128 MiB physical VMEM
        return 20 * 1024 * 1024, 64 * 1024 * 1024
    return 10 * 1024 * 1024, 32 * 1024 * 1024        # v7x (64 MiB per TC) or unknown


def _pick_batch_tile(batch, n_neg, d, itemsize, sub, input_budget_bytes, cap=1024):
    """Largest batch tile (multiple of `sub`) whose *padded*, double-buffered
    input blocks plus f32 intermediates fit the VMEM input budget."""
    k = 2 + n_neg
    lanes_in = _round_up(k * d, 128)                 # packed gathered stream (native dtype)
    lanes_d = _round_up(d, 128)                      # f32 xv / one live diff
    lanes_nd = _round_up(1 + n_neg, 128)             # dist / p / log blocks (f32)
    per_row = (
        2 * (lanes_in * itemsize + 128 * 4)          # double-buffered stream + weight blocks
        + 2 * lanes_d * 4                            # xv + one live diff (f32)
        + 4 * lanes_nd * 4                           # dist / p / log_arg / coeff (f32)
    )
    tb = int(input_budget_bytes // per_row)
    tb = (tb // sub) * sub
    tb = max(sub, min(tb, cap, _round_up(batch, sub)))
    return tb


def largevis_neg_loss(logits, xs, ys, y_neg, sample_edge_weight,
                      *, pos_times=20, neg_times=1, gamma=7.0, tb=None):
    """Pallas implementation of LargeVisNEGLoss.forward (returns a scalar)."""
    B = xs.shape[0]
    n_neg = y_neg.shape[1]
    D = logits.shape[1]
    K = 2 + n_neg

    itemsize = jnp.dtype(logits.dtype).itemsize
    sub = 8 * max(1, 4 // itemsize)                  # sublane multiple: 8 f32, 16 bf16, ...
    input_budget, vmem_limit = _budgets()

    if tb is None:
        tb = _pick_batch_tile(B, n_neg, D, itemsize, sub, input_budget)
        if B > sub:
            # Keep at least two grid tiles so "parallel" actually feeds both
            # TensorCores on v7x (harmless on single-TC chips: >=512-row tiles
            # remain near the HBM roofline for realistic B).
            tb = min(tb, _round_up(-(-B // 2), sub))
    tb = max(sub, (int(tb) // sub) * sub)

    num_tiles = int(pl.cdiv(B, tb))
    b_pad = num_tiles * tb

    # Pad the SMALL index / weight arrays before gathering (free) instead of
    # jnp.pad on the large gathered tensors.  Index 0 is always valid; weight 0
    # zeroes the padded rows' contribution (their finite logs are harmless).
    xs_i = xs.astype(jnp.int32)
    ys_i = ys.astype(jnp.int32)
    yn_i = y_neg.astype(jnp.int32)
    w = sample_edge_weight.astype(jnp.float32)
    if b_pad != B:
        pad = b_pad - B
        xs_i = jnp.pad(xs_i, (0, pad))
        ys_i = jnp.pad(ys_i, (0, pad))
        yn_i = jnp.pad(yn_i, ((0, pad), (0, 0)))
        w = jnp.pad(w, (0, pad))

    # Single packed gather -> one lane-dense stream in logits' native dtype.
    all_idx = jnp.concatenate([xs_i[:, None], ys_i[:, None], yn_i], axis=1)   # (b_pad, K)
    gathered = jnp.take(logits, all_idx.reshape(-1), axis=0).reshape(b_pad, K * D)
    w = w.reshape(b_pad, 1)

    kernel = functools.partial(
        _largevis_neg_loss_kernel,
        n_neg=n_neg,
        d=D,
        pos_times=float(pos_times),
        neg_times=float(neg_times),
        gamma=float(gamma),
    )

    partials = pl.pallas_call(
        kernel,
        out_shape=jax.ShapeDtypeStruct((num_tiles * 8, 128), jnp.float32),
        grid_spec=pltpu.PrefetchScalarGridSpec(
            num_scalar_prefetch=0,
            grid=(num_tiles,),
            in_specs=[
                pl.BlockSpec((tb, K * D), lambda i: (i, 0)),
                pl.BlockSpec((tb, 1), lambda i: (i, 0)),
            ],
            out_specs=pl.BlockSpec((8, 128), lambda i: (i, 0)),
        ),
        compiler_params=pltpu.CompilerParams(
            dimension_semantics=("parallel",),       # per-tile partials, no carry
            vmem_limit_bytes=vmem_limit,
        ),
    )(gathered, w)

    per_tile = partials.reshape(num_tiles, 8, 128)[:, 0, 0]     # (num_tiles,)
    return -jnp.sum(per_tile)


def _reference_loss(logits, xs, ys, y_neg, w, *, pos_times, neg_times, gamma):
    xv = logits[xs, :].astype(jnp.float32)
    yv = logits[ys, :].astype(jnp.float32)
    ynv = logits[y_neg, :].astype(jnp.float32)
    dis_pos = jnp.sum((xv - yv) ** 2, axis=1)
    dis_neg = jnp.sum((xv[:, None, :] - ynv) ** 2, axis=2)
    p_pos = jnp.clip(1.0 / (1.0 + 0.25 * dis_pos), 1e-12, 1.0 - 1e-12)
    p_neg = jnp.clip(1.0 / (1.0 + 0.25 * dis_neg), 1e-12, 0.99)
    lp_pos = jnp.log(p_pos) * pos_times
    lp_neg = jnp.log(1.0 - p_neg) * neg_times
    loss = jnp.sum(gamma * lp_neg, axis=1) + lp_pos
    return -jnp.sum(w.astype(jnp.float32) * loss)


if __name__ == "__main__":
    key = jax.random.PRNGKey(0)
    k_logits, k_xs, k_ys, k_neg, k_w = jax.random.split(key, 5)

    N = 64        # number of nodes (rows of `logits`)
    D = 32        # embedding dim
    B = 16        # batch size
    N_NEG = 4     # negatives per positive edge
    POS_TIMES = 20
    NEG_TIMES = 1
    GAMMA = 7.0

    logits = jax.random.normal(k_logits, (N, D), dtype=jnp.float32)
    xs = jax.random.randint(k_xs, (B,), 0, N)
    ys = jax.random.randint(k_ys, (B,), 0, N)
    y_neg = jax.random.randint(k_neg, (B, N_NEG), 0, N)
    sample_edge_weight = jax.random.uniform(k_w, (B,), dtype=jnp.float32)

    loss = largevis_neg_loss(
        logits, xs, ys, y_neg, sample_edge_weight,
        pos_times=POS_TIMES, neg_times=NEG_TIMES, gamma=GAMMA,
    )
    loss = jax.block_until_ready(loss)

    ref = _reference_loss(
        logits, xs, ys, y_neg, sample_edge_weight,
        pos_times=POS_TIMES, neg_times=NEG_TIMES, gamma=GAMMA,
    )
    ref = jax.block_until_ready(ref)

    assert jnp.allclose(loss, ref, rtol=1e-5, atol=1e-4), (loss, ref)
    print("KERNEL_OK")
</pallas_src>

<mosaic_0001>
module attributes {stable_mosaic.version = 11 : i64} {
  func.func @_largevis_neg_loss_kernel(%arg0: i32, %arg1: memref<8x192xf32, #tpu.memory_space<vmem>>, %arg2: memref<8x1xf32, #tpu.memory_space<vmem>>, %arg3: memref<8x128xf32, #tpu.memory_space<vmem>>) attributes {dimension_semantics = [#tpu.dimension_semantics<parallel>], iteration_bounds = array<i64: 2>, scalar_prefetch = 0 : i64, scratch_operands = 0 : i64, tpu.core_type = #tpu.core_type<tc>, window_params = [{transform_indices = @transform_0, window_bounds = array<i64: 8, 192>}, {transform_indices = @transform_1, window_bounds = array<i64: 8, 1>}, {transform_indices = @transform_2, window_bounds = array<i64: 8, 128>}]} {
    %c0 = arith.constant 0 : index
    %c0_0 = arith.constant 0 : index
    %0 = vector.load %arg1[%c0, %c0_0] : memref<8x192xf32, #tpu.memory_space<vmem>>, vector<8x32xf32>
    %1 = tpu.iota {dimensions = array<i32: 1>} : vector<8x5xi32>
    %cst = arith.constant 0.000000e+00 : f32
    %2 = vector.broadcast %cst : f32 to vector<8x5xf32>
    %c0_1 = arith.constant 0 : index
    %c32 = arith.constant 32 : index
    %3 = vector.load %arg1[%c0_1, %c32] : memref<8x192xf32, #tpu.memory_space<vmem>>, vector<8x32xf32>
    %4 = arith.subf %0, %3 : vector<8x32xf32>
    %5 = arith.mulf %4, %4 : vector<8x32xf32>
    %cst_2 = arith.constant dense<0.000000e+00> : vector<8xf32>
    %6 = vector.multi_reduction <add>, %5, %cst_2 [1] : vector<8x32xf32> to vector<8xf32>
    %7 = vector.shape_cast %6 : vector<8xf32> to vector<8x1xf32>
    %c0_i32 = arith.constant 0 : i32
    %8 = vector.broadcast %c0_i32 : i32 to vector<8x5xi32>
    %9 = arith.cmpi eq, %1, %8 : vector<8x5xi32>
    %cst_3 = arith.constant 0.000000e+00 : f32
    %10 = vector.shape_cast %7 : vector<8x1xf32> to vector<8x1xf32>
    %11 = vector.broadcast %10 : vector<8x1xf32> to vector<8x5xf32>
    %12 = vector.broadcast %cst_3 : f32 to vector<8x5xf32>
    %13 = arith.select %9, %11, %12 : vector<8x5xi1>, vector<8x5xf32>
    %14 = arith.addf %2, %13 : vector<8x5xf32>
    %c0_4 = arith.constant 0 : index
    %c64 = arith.constant 64 : index
    %15 = vector.load %arg1[%c0_4, %c64] : memref<8x192xf32, #tpu.memory_space<vmem>>, vector<8x32xf32>
    %16 = arith.subf %0, %15 : vector<8x32xf32>
    %17 = arith.mulf %16, %16 : vector<8x32xf32>
    %cst_5 = arith.constant dense<0.000000e+00> : vector<8xf32>
    %18 = vector.multi_reduction <add>, %17, %cst_5 [1] : vector<8x32xf32> to vector<8xf32>
    %19 = vector.shape_cast %18 : vector<8xf32> to vector<8x1xf32>
    %c1_i32 = arith.constant 1 : i32
    %20 = vector.broadcast %c1_i32 : i32 to vector<8x5xi32>
    %21 = arith.cmpi eq, %1, %20 : vector<8x5xi32>
    %cst_6 = arith.constant 0.000000e+00 : f32
    %22 = vector.shape_cast %19 : vector<8x1xf32> to vector<8x1xf32>
    %23 = vector.broadcast %22 : vector<8x1xf32> to vector<8x5xf32>
    %24 = vector.broadcast %cst_6 : f32 to vector<8x5xf32>
    %25 = arith.select %21, %23, %24 : vector<8x5xi1>, vector<8x5xf32>
    %26 = arith.addf %14, %25 : vector<8x5xf32>
    %c0_7 = arith.constant 0 : index
    %c96 = arith.constant 96 : index
    %27 = vector.load %arg1[%c0_7, %c96] : memref<8x192xf32, #tpu.memory_space<vmem>>, vector<8x32xf32>
    %28 = arith.subf %0, %27 : vector<8x32xf32>
    %29 = arith.mulf %28, %28 : vector<8x32xf32>
    %cst_8 = arith.constant dense<0.000000e+00> : vector<8xf32>
    %30 = vector.multi_reduction <add>, %29, %cst_8 [1] : vector<8x32xf32> to vector<8xf32>
    %31 = vector.shape_cast %30 : vector<8xf32> to vector<8x1xf32>
    %c2_i32 = arith.constant 2 : i32
    %32 = vector.broadcast %c2_i32 : i32 to vector<8x5xi32>
    %33 = arith.cmpi eq, %1, %32 : vector<8x5xi32>
    %cst_9 = arith.constant 0.000000e+00 : f32
    %34 = vector.shape_cast %31 : vector<8x1xf32> to vector<8x1xf32>
    %35 = vector.broadcast %34 : vector<8x1xf32> to vector<8x5xf32>
    %36 = vector.broadcast %cst_9 : f32 to vector<8x5xf32>
    %37 = arith.select %33, %35, %36 : vector<8x5xi1>, vector<8x5xf32>
    %38 = arith.addf %26, %37 : vector<8x5xf32>
    %c0_10 = arith.constant 0 : index
    %c128 = arith.constant 128 : index
    %39 = vector.load %arg1[%c0_10, %c128] : memref<8x192xf32, #tpu.memory_space<vmem>>, vector<8x32xf32>
    %40 = arith.subf %0, %39 : vector<8x32xf32>
    %41 = arith.mulf %40, %40 : vector<8x32xf32>
    %cst_11 = arith.constant dense<0.000000e+00> : vector<8xf32>
    %42 = vector.multi_reduction <add>, %41, %cst_11 [1] : vector<8x32xf32> to vector<8xf32>
    %43 = vector.shape_cast %42 : vector<8xf32> to vector<8x1xf32>
    %c3_i32 = arith.constant 3 : i32
    %44 = vector.broadcast %c3_i32 : i32 to vector<8x5xi32>
    %45 = arith.cmpi eq, %1, %44 : vector<8x5xi32>
    %cst_12 = arith.constant 0.000000e+00 : f32
    %46 = vector.shape_cast %43 : vector<8x1xf32> to vector<8x1xf32>
    %47 = vector.broadcast %46 : vector<8x1xf32> to vector<8x5xf32>
    %48 = vector.broadcast %cst_12 : f32 to vector<8x5xf32>
    %49 = arith.select %45, %47, %48 : vector<8x5xi1>, vector<8x5xf32>
    %50 = arith.addf %38, %49 : vector<8x5xf32>
    %c0_13 = arith.constant 0 : index
    %c160 = arith.constant 160 : index
    %51 = vector.load %arg1[%c0_13, %c160] : memref<8x192xf32, #tpu.memory_space<vmem>>, vector<8x32xf32>
    %52 = arith.subf %0, %51 : vector<8x32xf32>
    %53 = arith.mulf %52, %52 : vector<8x32xf32>
    %cst_14 = arith.constant dense<0.000000e+00> : vector<8xf32>
    %54 = vector.multi_reduction <add>, %53, %cst_14 [1] : vector<8x32xf32> to vector<8xf32>
    %55 = vector.shape_cast %54 : vector<8xf32> to vector<8x1xf32>
    %c4_i32 = arith.constant 4 : i32
    %56 = vector.broadcast %c4_i32 : i32 to vector<8x5xi32>
    %57 = arith.cmpi eq, %1, %56 : vector<8x5xi32>
    %cst_15 = arith.constant 0.000000e+00 : f32
    %58 = vector.shape_cast %55 : vector<8x1xf32> to vector<8x1xf32>
    %59 = vector.broadcast %58 : vector<8x1xf32> to vector<8x5xf32>
    %60 = vector.broadcast %cst_15 : f32 to vector<8x5xf32>
    %61 = arith.select %57, %59, %60 : vector<8x5xi1>, vector<8x5xf32>
    %62 = arith.addf %50, %61 : vector<8x5xf32>
    %c0_i32_16 = arith.constant 0 : i32
    %63 = vector.broadcast %c0_i32_16 : i32 to vector<8x5xi32>
    %64 = arith.cmpi eq, %1, %63 : vector<8x5xi32>
    %cst_17 = arith.constant 2.500000e-01 : f32
    %65 = vector.broadcast %cst_17 : f32 to vector<8x5xf32>
    %66 = arith.mulf %65, %62 : vector<8x5xf32>
    %cst_18 = arith.constant 1.000000e+00 : f32
    %67 = vector.broadcast %cst_18 : f32 to vector<8x5xf32>
    %68 = arith.addf %67, %66 : vector<8x5xf32>
    %cst_19 = arith.constant 1.000000e+00 : f32
    %69 = vector.broadcast %cst_19 : f32 to vector<8x5xf32>
    %70 = arith.divf %69, %68 : vector<8x5xf32>
    %cst_20 = arith.constant 1.000000e+00 : f32
    %cst_21 = arith.constant 9.900000e-01 : f32
    %71 = vector.broadcast %cst_20 : f32 to vector<8x5xf32>
    %72 = vector.broadcast %cst_21 : f32 to vector<8x5xf32>
    %73 = arith.select %64, %71, %72 : vector<8x5xi1>, vector<8x5xf32>
    %74 = arith.minimumf %70, %73 : vector<8x5xf32>
    %cst_22 = arith.constant 9.99999996E-13 : f32
    %75 = vector.broadcast %cst_22 : f32 to vector<8x5xf32>
    %76 = arith.maximumf %74, %75 : vector<8x5xf32>
    %cst_23 = arith.constant 1.000000e+00 : f32
    %77 = vector.broadcast %cst_23 : f32 to vector<8x5xf32>
    %78 = arith.subf %77, %76 : vector<8x5xf32>
    %79 = arith.select %64, %76, %78 : vector<8x5xi1>, vector<8x5xf32>
    %cst_24 = arith.constant 2.000000e+01 : f32
    %cst_25 = arith.constant 7.000000e+00 : f32
    %80 = vector.broadcast %cst_24 : f32 to vector<8x5xf32>
    %81 = vector.broadcast %cst_25 : f32 to vector<8x5xf32>
    %82 = arith.select %64, %80, %81 : vector<8x5xi1>, vector<8x5xf32>
    %83 = math.log %79 : vector<8x5xf32>
    %84 = arith.mulf %83, %82 : vector<8x5xf32>
    %cst_26 = arith.constant dense<0.000000e+00> : vector<8xf32>
    %85 = vector.multi_reduction <add>, %84, %cst_26 [1] : vector<8x5xf32> to vector<8xf32>
    %86 = vector.shape_cast %85 : vector<8xf32> to vector<8x1xf32>
    %c0_27 = arith.constant 0 : index
    %c0_28 = arith.constant 0 : index
    %87 = vector.load %arg2[%c0_27, %c0_28] : memref<8x1xf32, #tpu.memory_space<vmem>>, vector<8x1xf32>
    %88 = arith.mulf %87, %86 : vector<8x1xf32>
    %89 = vector.shape_cast %88 : vector<8x1xf32> to vector<1x8x1xf32>
    %cst_29 = arith.constant dense<0.000000e+00> : vector<1xf32>
    %90 = vector.multi_reduction <add>, %89, %cst_29 [1, 2] : vector<1x8x1xf32> to vector<1xf32>
    %91 = vector.shape_cast %90 : vector<1xf32> to vector<1x1x1xf32>
    %92 = vector.extract %91[0, 0, 0] : f32 from vector<1x1x1xf32>
    %93 = vector.broadcast %92 : f32 to vector<8x128xf32>
    %c0_30 = arith.constant 0 : index
    %c0_31 = arith.constant 0 : index
    %94 = vector.load %arg3[%c0_30, %c0_31] : memref<8x128xf32, #tpu.memory_space<vmem>>, vector<8x128xf32>
    tpu.vector_store %arg3[%c0_30, %c0_31], %93 {strides = array<i32>} : memref<8x128xf32, #tpu.memory_space<vmem>>, vector<8x128xf32>,
    return
  }
  func.func @transform_0(%arg0: i32) -> (i32, i32) {
    %c0_i32 = arith.constant 0 : i32
    %c0_i32_0 = arith.constant 0 : i32
    return %arg0, %c0_i32 : i32, i32
  }
  func.func @transform_1(%arg0: i32) -> (i32, i32) {
    %c0_i32 = arith.constant 0 : i32
    %c0_i32_0 = arith.constant 0 : i32
    return %arg0, %c0_i32 : i32, i32
  }
  func.func @transform_2(%arg0: i32) -> (i32, i32) {
    %c0_i32 = arith.constant 0 : i32
    %c0_i32_0 = arith.constant 0 : i32
    return %arg0, %c0_i32 : i32, i32
  }
}

</mosaic_0001>

<bundles_post_ra>
// kernel: tpu_custom_call.1
= control target key start
LH: loop header
LB: loop body
LE: loop exit
PB: predicated region body
PF: predicated region fallthrough
CT: control target
= control target key end

     0   :  { %7 = vsyncpa [#allocation3], 0  ;;  %s714_s0 = inlined_call_operand.hbm [shape: f32[16,192], index: 0, kind: input, shape index: {}]   ;;  %s715_s1 = inlined_call_operand.vmem [shape: f32[16,1], index: 1, kind: input, shape index: {}]   ;;  %s716_s2 = inlined_call_operand.hbm [shape: f32[16,128], index: 2, kind: output, shape index: {}]  }
   0x1   :  { %9 = vsyncpa [#allocation3 + $0x1], 0 }
   0x2   :  { %10 = vsyncpa [#allocation4], 0 }
   0x3   :  { %12 = vsyncpa [#allocation4 + $0x1], 0  ;;  %s552_s9 = smov 0   ;;  %s554_s10 = smov 0  }
   0x4   :  { %s556_s11 = smov 0   ;;  %s558_s12 = smov 0  }
   0x5 LB: > { %s573_s13 = sadd.s32 4294967295, %s528_s12   ;;  %s364_s14 = sadd.s32 4294967294, %s528_s12   ;;  %s528_s12 = sphi %s558_s12, %s733_s12   ;;  %s524_s11 = sphi %s556_s11, %s732_s11   ;;  %s520_s10 = sphi %s554_s10, %s731_s10   ;;  %s516_s9 = sphi %s552_s9, %s730_s9  }
   0x6   : > { %s577_s15 = sadd.s32 1, %s528_s12   ;;  %s25_s16 = sadd.s32 1, %s524_s11 }
   0x7   : > { %s22_s17 = ssub.s32 %s528_s12, %s577_s15  ;;  %p32_p0 = scmp.ne.s32.totalorder %s524_s11, %s520_s10 }
   0x8   : > { %p23_p1 = scmp.eq.s32.totalorder %s22_s17, 0  ;;  %p33_p2 = scmp.eq.s32.totalorder %s528_s12, 0 }
   0x9   : > { %p38_p3 = scmp.ne.s32.totalorder %s520_s10, %s516_s9  ;;  %p39_p4 = scmp.eq.s32.totalorder %s573_s13, 0 }
   0xa   : > { %s589_s18 = scalar_select %p23_p1, %s524_s11, %s25_s16  }
   0xb   : > { %p591_p5 = por %p33_p2, %p32_p0  ;;  %p595_p6 = por %p39_p4, %p38_p3 }
   0xc   : > { %p88_p7 = scmp.eq.s32.totalorder %s573_s13, 1  ;;  %p94_p8 = scmp.eq.s32.totalorder %s364_s14, 1 }
   0xd   : > { %s720_s20 = scalar_select %p595_p6, 1, 0 }
   0xe   : > { %p393_p10 = scmp.lt.s32.totalorder %s528_s12, 2  ;;  %p602_p11 = por %p88_p7, %p32_p0 }
   0xf   : > { %p606_p12 = por %p94_p8, %p38_p3  ;;  %s114_s23 = sand.u32 1, %s524_s11  }
  0x10   : > { %s721_s21 = scalar_select %p602_p11, 1, 0 }
  0x11   : > { %s722_s22 = scalar_select %p606_p12, 1, 0 }
  0x12   : > { %s378_s24 = sshll.u32 %s528_s12, 8  ;;  %s367_s25 = sshll.u32 %s114_s23, 4 }
  0x13   : > { %s615_s28 = scalar_lea.hbm %s714_s0, %s378_s24  ;;  %s118_s29 = scalar_lea.vmem [#allocation2], %s367_s25 }
  0x14   : > { %s126_s30 = sshll.u32 %s118_s29, 4  ;;  %p619_p13 = pnand %p393_p10, %p591_p5  ;;  %s623_s30 = int_to_ptr.vmem [resolvable:$true] %s126_s30 }
  0x15   : > { %s115_s4 = scalar_lea.sflag [#allocation3], %s114_s23  ;;  %s436_s5 = scalar_lea.hbm %s615_s28, 256 }
  0x16   : > { %p437_p2 = scmp.ne.s32.totalorder %s615_s28, %s436_s5  ;;  %p438_p3 = pneg %p619_p13 }
  0x17   : > { %s441_s8 = scalar_lea.hbm %s714_s0, 512  ;;  %p442_p5 = scmp.lt.s32.totalorder %s615_s28, %s714_s0 }
  0x18   : > { %p439_p4 = pnand %p438_p3, %p437_p2  ;;  %p443_p8 = scmp.lt.s32.totalorder %s441_s8, %s436_s5 }
  0x1a   : > { %p440_p7 = pneg %p439_p4  ;;  %p444_p10 = por %p443_p8, %p442_p5 }
  0x1c   : > { %p445_p9 = pnand %p444_p10, %p440_p7 }
  0x1e   : > { %448 = shalt.err (!%p445_p9)
}
  0x1f   : > { %s449_s17 = scalar_lea.vmem %s623_s30, 256  ;;  %s530_s19 = smov [#allocation2]  }
  0x20   : > { %p450_p0 = scmp.ne.s32.totalorder %s623_s30, %s449_s17  ;;  %s454_s23 = sshll.u32 %s530_s19, 4  ;;  %s455_s23 = int_to_ptr.vmem [resolvable:$false] %s454_s23 }
  0x21   : > { %s456_s24 = scalar_lea.vmem %s455_s23, 512  ;;  %p457_p4 = scmp.lt.s32.totalorder %s623_s30, %s455_s23 }
  0x22   : > { %p452_p1 = pnand %p450_p0, %p438_p3  ;;  %p458_p12 = scmp.lt.s32.totalorder %s456_s24, %s449_s17 }
  0x24   : > { %p453_p2 = pneg %p452_p1  ;;  %p459_p11 = por %p458_p12, %p457_p4 }
  0x26   : > { %p460_p6 = pnand %p459_p11, %p453_p2 }
  0x28   : > { %463 = shalt.err (!%p460_p6)
}
  0x29   : > { %388 = dma.hbm_to_vmem [thread:$0]  (!%p619_p13), %s615_s28, 256, %s623_s30, %s115_s4  }
  0x2a   : > { %p724_p9 = scmp.lt.s32.totalorder %s528_s12, 3  ;;  %p725_p7 = scmp.ge.s32.totalorder %s528_s12, 1 }
  0x2c   : > { %p139_p0 = pnand %p725_p7, %p724_p9 }
  0x2d   : > { %s650_s25 = sand.u32 (!%p139_p0), 1, %s520_s10   ;;  %p726_p6 = scmp.ne.s32.totalorder (!%p139_p0), %s720_s20, 0 }
  0x2e   : > { %142 = sbr.rel (%p139_p0) target bundleno = 723 (0x2d3), region = 28  ;;  %s371_s26 = sshll.u32 (!%p139_p0), %s650_s25, 4 }
  0x2f   : > { %s145_s27 = scalar_lea.sflag (!%p139_p0), [#allocation3], %s650_s25  ;;  %s148_s29 = scalar_lea.vmem (!%p139_p0), [#allocation2], %s371_s26 }
  0x33   : > { %507 = dma.done.wait (%p726_p6), %s145_s27, 256  }
  0x34   : > { %509 = vsyncadd (%p726_p6), %s145_s27, 4294967040  ;;  %v177_v0 = vld [vmem:[%s148_s29] sm:$0xff]  ;;  %s531_s28 = smov 96   ;;  %s532_s30 = smov 32   ;;  %v215_v1 = vld [vmem:[%s148_s29 + $0x8] sm:$0xff]  ;;  %vm186_vm0 = vcmask 261120   ;;  %v178_v21 = vlaneseq }
  0x35   : > { %181 = vrot.lane.b32.xlu0 %v177_v0, %s531_s28  ;;  %204 = vrot.lane.b32.xlu1 %v177_v0, %s532_s30  ;;  %s533_s3 = smov 64   ;;  %v216_v6 = vsub.f32 %v177_v0, %v215_v1  ;;  %v534_v39 = vmov 0.99   ;;  %v535_v47 = vmov 7.0   ;;  %vm249_vm6 = vcmask 39936   ;;  %p173_p11 = scmp.lt.s32.totalorder %s573_s13, 1 }
  0x36   : > { %v179_v22 = vand.u32 127, %v178_v21  ;;  %vm255_vm7 = vcmask 7168   ;;  %s372_s8 = sshll.u32 %s650_s25, 3  ;;  %s375_s17 = sshll.u32 %s573_s13, 7 }
  0x37   : > { %v217_v17 = vmul.f32 %v216_v6, %v216_v6  ;;  %s174_s20 = scalar_select %p173_p11, %s573_s13, 1 }
  0x38   : > { %vm190_vm1 = vcmp.eq.s32.totalorder %v179_v22, 0  ;;  %vm201_vm2 = vcmp.eq.s32.totalorder %v179_v22, 1  ;;  %vm212_vm3 = vcmp.eq.s32.totalorder %v179_v22, 2  ;;  %vm221_vm4 = vcmp.eq.s32.totalorder %v179_v22, 3  ;;  %s172_s14 = scalar_lea.vmem [#allocation5], %s372_s8  ;;  %s280_s26 = scalar_lea.hbm %s716_s2, %s375_s17 }
  0x39   : > { %193 = vrot.lane.b32.xlu0 %v177_v0, %s533_s3  ;;  %225 = vrot.lane.b32.xlu1 %v215_v1, %s531_s28  ;;  %v218_v19 = vsel %vm186_vm0, %v217_v17, 0.0  ;;  %vm233_vm5 = vcmp.eq.s32.totalorder %v179_v22, 4  ;;  %v240_v40 = vsel %vm190_vm1, 1.0, %v534_v39  ;;  %v245_v48 = vsel %vm190_vm1, 20.0, %v535_v47  ;;  %s373_s4 = sshll.u32 %s174_s20, 3  ;;  %s282_s16 = sshll.u32 %s172_s14, 4  ;;  %s674_s16 = int_to_ptr.vmem [resolvable:$true] %s282_s16 }
  0x3a   : > { %s176_s7 = scalar_lea.vmem %s715_s1, %s373_s4  ;;  %s269_s27 = scalar_lea.sflag [#allocation4], %s650_s25 }
  0x3b   : > { %v253_v52 = vld [vmem:[%s176_s7] sm:$0xff]  ;;  %s464_s29 = scalar_lea.vmem %s674_s16, 128  ;;  %p727_p13 = scmp.ne.s32.totalorder %s721_s21, 0 }
  0x3c   : > { %p465_p12 = scmp.ne.s32.totalorder %s674_s16, %s464_s29  ;;  %s536_s28 = smov [#allocation5]  }
  0x3d   : > { %s468_s13 = sshll.u32 %s536_s28, 4  ;;  %s469_s13 = int_to_ptr.vmem [resolvable:$false] %s468_s13 }
  0x3e   : > { %p466_p1 = pnand %p465_p12, %p727_p13  ;;  %s470_s30 = scalar_lea.vmem %s469_s13, 256 }
  0x3f   : > { %p471_p5 = scmp.lt.s32.totalorder %s674_s16, %s469_s13  ;;  %p472_p8 = scmp.lt.s32.totalorder %s470_s30, %s464_s29 }
  0x40   : > { %p467_p3 = pneg %p466_p1 }
  0x41   : > { %p473_p10 = por %p472_p8, %p471_p5 }
  0x43   : > { %p474_p2 = pnand %p473_p10, %p467_p3 }
  0xa7   : > { %v182_v2 = vpop.permute.xlu0 %181  ;;  %v205_v3 = vpop.permute.xlu1 %204 }
  0xa8   : > { %v184_v4 = vsub.f32 %v177_v0, %v182_v2  ;;  %v207_v5 = vsub.f32 %v177_v0, %v205_v3 }
  0xaa   : > { %v185_v7 = vmul.f32 %v184_v4, %v184_v4  ;;  %v208_v8 = vmul.f32 %v207_v5, %v207_v5 }
  0xab   : > { %v194_v9 = vpop.permute.xlu0 %193  ;;  %v226_v10 = vpop.permute.xlu1 %225 }
  0xac   : > { %v196_v11 = vsub.f32 %v177_v0, %v194_v9  ;;  %v187_v12 = vsel %vm186_vm0, %v185_v7, 0.0  ;;  %v228_v13 = vsub.f32 %v177_v0, %v226_v10  ;;  %v209_v16 = vsel %vm186_vm0, %v208_v8, 0.0 }
  0xad   : > { %188 = vadd.xlane.f32.xlu0 %v187_v12 }
  0xae   : > { %v197_v14 = vmul.f32 %v196_v11, %v196_v11  ;;  %v229_v15 = vmul.f32 %v228_v13, %v228_v13 }
  0xb0   : > { %v198_v18 = vsel %vm186_vm0, %v197_v14, 0.0  ;;  %v230_v20 = vsel %vm186_vm0, %v229_v15, 0.0 }
  0xb1   : > { %210 = vadd.xlane.f32.xlu0 %v209_v16  ;;  %199 = vadd.xlane.f32.xlu1 %v198_v18 }
  0xb5   : > { %219 = vadd.xlane.f32.xlu0 %v218_v19  ;;  %231 = vadd.xlane.f32.xlu1 %v230_v20 }
 0x136   : > { %v189_v23 = vpop.xlane.xlu0 %188 }
 0x137   : > { %v191_v26 = vsel %vm190_vm1, %v189_v23, 0.0 }
 0x13a   : > { %v200_v24 = vpop.xlane.xlu1 %199  ;;  %v211_v25 = vpop.xlane.xlu0 %210 }
 0x13b   : > { %v202_v27 = vsel %vm201_vm2, %v200_v24, 0.0  ;;  %v213_v29 = vsel %vm212_vm3, %v211_v25, 0.0 }
 0x13c   : > { %v203_v28 = vadd.f32 %v202_v27, %v191_v26 }
 0x13e   : > { %v214_v30 = vadd.f32 %v213_v29, %v203_v28  ;;  %v220_v31 = vpop.xlane.xlu0 %219  ;;  %v232_v32 = vpop.xlane.xlu1 %231 }
 0x13f   : > { %v222_v33 = vsel %vm221_vm4, %v220_v31, 0.0  ;;  %v234_v34 = vsel %vm233_vm5, %v232_v32, 0.0 }
 0x140   : > { %v223_v35 = vadd.f32 %v222_v33, %v214_v30 }
 0x142   : > { %v235_v36 = vadd.f32 %v234_v34, %v223_v35 }
 0x144   : > { %v236_v37 = vmul.f32 0.25, %v235_v36 }
 0x146   : > { %v237_v38 = vadd.f32 1.0, %v236_v37 }
 0x148   : > { %432 = vrcp.f32 %v237_v38 }
 0x155   : > { %v433_v41 = vpop.eup %432 }
 0x156   : > { %v241_v42 = vmin.f32 %v433_v41, %v240_v40 }
 0x158   : > { %v242_v43 = vmax.f32 %v241_v42, 1e-12 }
 0x15a   : > { %v243_v44 = vsub.f32 1.0, %v242_v43 }
 0x15c   : > { %v244_v45 = vsel %vm190_vm1, %v242_v43, %v243_v44 }
 0x15d   : > { %434 = vlog2.f32 %v244_v45 }
 0x16a   : > { %v435_v46 = vpop.eup %434 }
 0x16b   : > { %v247_v49 = vmul.f32 0.6931472, %v435_v46 }
 0x16d   : > { %v248_v50 = vmul.f32 %v247_v49, %v245_v48 }
 0x16f   : > { %v250_v51 = vsel %vm249_vm6, %v248_v50, 0.0 }
 0x170   : > { %251 = vadd.xlane.f32.xlu0 %v250_v51 }
 0x1f9   : > { %v252_v53 = vpop.xlane.xlu0 %251 }
 0x1fa   : > { %v254_v54 = vmul.f32 %v253_v52, %v252_v53 }
 0x1fc   : > { %v256_v55 = vsel %vm255_vm7, %v254_v54, 0.0 }
 0x1fd   : > { %257 = vadd.xlane.f32.xlu1 %v256_v55 }
 0x286   : > { %v258_v56 = vpop.xlane.xlu1 %257 }
 0x287   : > { %v259_v57 = vrot.slane %v258_v56, 4 }
 0x289   : > { %v260_v58 = vadd.f32 %v259_v57, %v258_v56 }
 0x28b   : > { %v261_v59 = vrot.slane %v260_v58, 2 }
 0x28d   : > { %v262_v60 = vadd.f32 %v261_v59, %v260_v58 }
 0x28f   : > { %v263_v61 = vrot.slane %v262_v60, 1 }
 0x291   : > { %v264_v62 = vadd.f32 %v263_v61, %v262_v60 }
 0x293   : > { %379 = vpush %v264_v62 }
 0x2c4   : > { %s380_s19 = spop %379 }
 0x2c5   : > { %v266_v63 = vstv %s380_s19 }
 0x2c6   : > { %267 = vst [vmem:[%s172_s14] sm:$0xff] %v266_v63 }
 0x2c7   : > { %477 = shalt.err (!%p474_p2)
}
 0x2c8   : > { %s478_s3 = scalar_lea.hbm %s280_s26, 128  ;;  %s482_s4 = scalar_lea.hbm %s716_s2, 256 }
 0x2c9   : > { %p479_p4 = scmp.ne.s32.totalorder %s280_s26, %s478_s3  ;;  %p483_p0 = scmp.lt.s32.totalorder %s280_s26, %s716_s2 }
 0x2ca   : > { %p484_p6 = scmp.lt.s32.totalorder %s482_s4, %s478_s3 }
 0x2cb   : > { %p480_p9 = pnand %p479_p4, %p727_p13 }
 0x2cc   : > { %p485_p11 = por %p484_p6, %p483_p0 }
 0x2cd   : > { %p481_p7 = pneg %p480_p9 }
 0x2cf   : > { %p486_p12 = pnand %p485_p11, %p481_p7 }
 0x2d1   : > { %489 = shalt.err (!%p486_p12)
}
 0x2d2   : > { %383 = dma.vmem_to_hbm [thread:$0]  (%p727_p13), %s674_s16, 128, %s280_s26, %s269_s27  }
 0x2d3 PF: > { %s294_s7 = sand.u32 1, %s516_s9   ;;  %p728_p1 = scmp.ne.s32.totalorder %s722_s22, 0 }
 0x2d4   : > { %p729_p3 = scmp.ge.s32.totalorder %s528_s12, 2  ;;  %s295_s8 = scalar_lea.sflag [#allocation4], %s294_s7 }
 0x2d6   : > { %p390_p5 = pnand %p729_p3, %p728_p1 }
 0x2d8   : > { %p391_p8 = pneg %p390_p5 }
 0x2da   : > { %511 = dma.done.wait (%p391_p8), %s295_s8, 128  }
 0x2db   : > { %513 = vsyncadd (%p391_p8), %s295_s8, 4294967168  ;;  %p15_p10 = scmp.ge.s32.totalorder %s577_s15, 4   ;;  %s730_s9 = smov %s520_s10 }
 0x2dc   : > { %s731_s10 = smov %s524_s11  ;;  %s732_s11 = smov %s589_s18 }
 0x2dd   : > { %s733_s12 = smov %s577_s15  ;;  %17 = sbr.rel (!%p15_p10) target bundleno = 5 (0x5), region = 76 }
 0x2e2   :  { %300 = vsyncpa [#allocation3], 1 }
 0x2e3   :  { %302 = vsyncpa [#allocation3 + $0x1], 1 }
 0x2e4   :  { %303 = vsyncpa [#allocation4], 1 }
 0x2e5   :  { %305 = vsyncpa [#allocation4 + $0x1], 1 }

</bundles_post_ra>
